<compile_context>
chip_gen: v7x
topology: tpu7x:2x2x1
jax: 0.10.0
libtpu: 0.0.40
codegen_flags: <defaults>
</compile_context>

<pallas_src>
import functools

import jax
import jax.numpy as jnp
from jax.experimental import pallas as pl
from jax.experimental.pallas import tpu as pltpu


_MAX_TILE_ROWS = 2048
_MIN_TILES = 8  # pipeline depth + megacore sharding headroom on v7x


def _round_up(x, m):
    return ((x + m - 1) // m) * m


def _sublane_multiple(*dtypes):
    # Rows per packed sublane group: 8 for 4-byte, 16 for 2-byte, 32 for 1-byte.
    m = 8
    for dt in dtypes:
        it = jnp.dtype(dt).itemsize
        m = max(m, 8 * max(1, 4 // it))
    return m


def _vmem_capacity_bytes():
    try:
        return int(pltpu.get_tpu_info().vmem_capacity_bytes)
    except Exception:
        return 64 * 1024 * 1024  # conservative (v7x-sized) fallback


def _plan_tiling(n, c, logits_dtype, labels_dtype):
    """Returns (tile_rows, n_tiles, vmem_limit_bytes)."""
    capacity = _vmem_capacity_bytes()
    budget = (capacity * 3) // 4  # ~48 MiB on v7x, ~96 MiB on v5e/v6e

    in_bytes = (jnp.dtype(logits_dtype).itemsize
                + jnp.dtype(labels_dtype).itemsize)
    # Only the two inputs are double-buffered by the BlockSpec pipeline;
    # ~4 single-buffered f32 (T, C) temporaries cover the compute path.
    per_row = c * (2 * in_bytes + 4 * 4)

    sublane = _sublane_multiple(logits_dtype, labels_dtype)
    tile = budget // per_row
    tile = max(sublane, min(_MAX_TILE_ROWS, (tile // sublane) * sublane))
    # Keep >= _MIN_TILES grid steps when N allows it (pipelining, both v7x TCs).
    tile = min(tile, _round_up(pl.cdiv(n, _MIN_TILES), sublane))
    # Never larger than the sublane-padded batch.
    tile = min(tile, _round_up(n, sublane))
    tile = max(tile, sublane)

    n_tiles = pl.cdiv(n, tile)
    footprint = tile * per_row + (1 << 20)  # + slack for output/semaphores
    vmem_limit = min(capacity, max(32 * 1024 * 1024, int(footprint * 1.25)))
    return tile, n_tiles, vmem_limit


def _dense_ce_kernel(logits_ref, labels_ref, out_ref, *,
                     tile_rows, n_tiles, valid_last):
    x = logits_ref[...].astype(jnp.float32)   # (T, C)
    y = labels_ref[...].astype(jnp.float32)   # (T, C)

    # row_loss = lse(x) * sum(y) - sum(y * x), with a numerically stable lse.
    m = jnp.max(x, axis=-1, keepdims=True)                               # (T,1)
    lse = m + jnp.log(jnp.sum(jnp.exp(x - m), axis=-1, keepdims=True))   # (T,1)
    sy = jnp.sum(y, axis=-1, keepdims=True)                              # (T,1)
    syx = jnp.sum(y * x, axis=-1, keepdims=True)                         # (T,1)
    row_loss = lse * sy - syx                                            # (T,1)

    def _store(rl):
        # Per-tile scalar partial sum into the (1,1,1) output block.
        out_ref[0] = jnp.sum(rl, axis=0, keepdims=True)

    if valid_last == tile_rows:
        # N divides evenly into tiles: no masking anywhere.
        _store(row_loss)
    else:
        i = pl.program_id(0)

        @pl.when(i < n_tiles - 1)
        def _():
            _store(row_loss)

        @pl.when(i == n_tiles - 1)
        def _():
            # Zero padded rows of the ragged last tile (isolates any NaN/Inf
            # from uninitialized padding) so the wrapper divides by true N.
            row_idx = jax.lax.broadcasted_iota(jnp.int32, (tile_rows, 1), 0)
            _store(jnp.where(row_idx < valid_last, row_loss, 0.0))


def dense_cross_entropy(logits, labels):
    """Pallas implementation of DenseCrossEntropy.forward. Returns a scalar f32."""
    n, c = logits.shape
    assert labels.shape == (n, c)

    tile_rows, n_tiles, vmem_limit = _plan_tiling(
        n, c, logits.dtype, labels.dtype)
    valid_last = n - (n_tiles - 1) * tile_rows

    kernel = functools.partial(
        _dense_ce_kernel,
        tile_rows=tile_rows, n_tiles=n_tiles, valid_last=valid_last)

    partials = pl.pallas_call(
        kernel,
        out_shape=jax.ShapeDtypeStruct((n_tiles, 1, 1), jnp.float32),
        grid_spec=pltpu.PrefetchScalarGridSpec(
            num_scalar_prefetch=0,
            grid=(n_tiles,),
            in_specs=[
                pl.BlockSpec((tile_rows, c), lambda i: (i, 0)),
                pl.BlockSpec((tile_rows, c), lambda i: (i, 0)),
            ],
            out_specs=pl.BlockSpec((1, 1, 1), lambda i: (i, 0, 0)),
        ),
        compiler_params=pltpu.CompilerParams(
            dimension_semantics=("parallel",),
            vmem_limit_bytes=vmem_limit,
        ),
    )(logits, labels)

    # Tiny (n_tiles,) reduction; padded rows already excluded in-kernel.
    return jnp.sum(partials) / jnp.float32(n)


def _reference(logits, labels):
    x = logits.astype(jnp.float32)
    y = labels.astype(jnp.float32)
    logprobs = jax.nn.log_softmax(x, axis=-1)
    return jnp.mean(jnp.sum(-y * logprobs, axis=-1))


if __name__ == "__main__":
    key = jax.random.PRNGKey(0)
    k1, k2, k3, k4, k5, k6 = jax.random.split(key, 6)

    # Case 1: f32 inputs, lane-aligned class count, N a multiple of the tile.
    n1, c1 = 16, 128
    logits1 = jax.random.normal(k1, (n1, c1), dtype=jnp.float32) * 3.0
    raw1 = jax.random.uniform(k2, (n1, c1), dtype=jnp.float32)
    labels1 = raw1 / jnp.sum(raw1, axis=-1, keepdims=True)

    out1 = jax.block_until_ready(dense_cross_entropy(logits1, labels1))
    ref1 = jax.block_until_ready(_reference(logits1, labels1))
    assert jnp.allclose(out1, ref1, rtol=1e-5, atol=1e-5), (out1, ref1)

    # Case 2: bf16 inputs (half the HBM traffic), ragged N, non-128 classes.
    n2, c2 = 13, 96
    logits2 = (jax.random.normal(k3, (n2, c2), dtype=jnp.float32) * 3.0
               ).astype(jnp.bfloat16)
    raw2 = jax.random.uniform(k4, (n2, c2), dtype=jnp.float32)
    labels2 = (raw2 / jnp.sum(raw2, axis=-1, keepdims=True)).astype(jnp.bfloat16)

    out2 = jax.block_until_ready(dense_cross_entropy(logits2, labels2))
    ref2 = jax.block_until_ready(_reference(logits2, labels2))
    assert jnp.allclose(out2, ref2, rtol=1e-4, atol=1e-4), (out2, ref2)

    # Case 3: f32, multi-tile grid with a ragged last tile (exercises both
    # pl.when branches of the masked path).
    n3, c3 = 50, 256
    logits3 = jax.random.normal(k5, (n3, c3), dtype=jnp.float32) * 3.0
    raw3 = jax.random.uniform(k6, (n3, c3), dtype=jnp.float32)
    labels3 = raw3 / jnp.sum(raw3, axis=-1, keepdims=True)

    out3 = jax.block_until_ready(dense_cross_entropy(logits3, labels3))
    ref3 = jax.block_until_ready(_reference(logits3, labels3))
    assert jnp.allclose(out3, ref3, rtol=1e-5, atol=1e-5), (out3, ref3)

    print("KERNEL_OK")
</pallas_src>

<mosaic_0001>
module attributes {stable_mosaic.version = 11 : i64} {
  func.func @_dense_ce_kernel(%arg0: i32, %arg1: memref<8x128xf32, #tpu.memory_space<vmem>>, %arg2: memref<8x128xf32, #tpu.memory_space<vmem>>, %arg3: memref<1x1x1xf32, #tpu.memory_space<vmem>>) attributes {dimension_semantics = [#tpu.dimension_semantics<parallel>], iteration_bounds = array<i64: 2>, scalar_prefetch = 0 : i64, scratch_operands = 0 : i64, tpu.core_type = #tpu.core_type<tc>, window_params = [{transform_indices = @transform_0, window_bounds = array<i64: 8, 128>}, {transform_indices = @transform_1, window_bounds = array<i64: 8, 128>}, {transform_indices = @transform_2, window_bounds = array<i64: 1, 1, 1>}]} {
    %c0 = arith.constant 0 : index
    %c0_0 = arith.constant 0 : index
    %0 = vector.load %arg1[%c0, %c0_0] : memref<8x128xf32, #tpu.memory_space<vmem>>, vector<8x128xf32>
    %c0_1 = arith.constant 0 : index
    %c0_2 = arith.constant 0 : index
    %1 = vector.load %arg2[%c0_1, %c0_2] : memref<8x128xf32, #tpu.memory_space<vmem>>, vector<8x128xf32>
    %cst = arith.constant dense<0xFF800000> : vector<8xf32>
    %2 = vector.multi_reduction <maximumf>, %0, %cst [1] : vector<8x128xf32> to vector<8xf32>
    %3 = vector.shape_cast %2 : vector<8xf32> to vector<8x1xf32>
    %4 = vector.broadcast %3 : vector<8x1xf32> to vector<8x128xf32>
    %5 = arith.subf %0, %4 : vector<8x128xf32>
    %6 = math.exp %5 : vector<8x128xf32>
    %cst_3 = arith.constant dense<0.000000e+00> : vector<8xf32>
    %7 = vector.multi_reduction <add>, %6, %cst_3 [1] : vector<8x128xf32> to vector<8xf32>
    %8 = vector.shape_cast %7 : vector<8xf32> to vector<8x1xf32>
    %9 = math.log %8 : vector<8x1xf32>
    %10 = arith.addf %3, %9 : vector<8x1xf32>
    %cst_4 = arith.constant dense<0.000000e+00> : vector<8xf32>
    %11 = vector.multi_reduction <add>, %1, %cst_4 [1] : vector<8x128xf32> to vector<8xf32>
    %12 = vector.shape_cast %11 : vector<8xf32> to vector<8x1xf32>
    %13 = arith.mulf %1, %0 : vector<8x128xf32>
    %cst_5 = arith.constant dense<0.000000e+00> : vector<8xf32>
    %14 = vector.multi_reduction <add>, %13, %cst_5 [1] : vector<8x128xf32> to vector<8xf32>
    %15 = vector.shape_cast %14 : vector<8xf32> to vector<8x1xf32>
    %16 = arith.mulf %10, %12 : vector<8x1xf32>
    %17 = arith.subf %16, %15 : vector<8x1xf32>
    %cst_6 = arith.constant dense<0.000000e+00> : vector<1xf32>
    %18 = vector.multi_reduction <add>, %17, %cst_6 [0] : vector<8x1xf32> to vector<1xf32>
    %19 = vector.shape_cast %18 : vector<1xf32> to vector<1x1xf32>
    %c0_7 = arith.constant 0 : index
    %c0_8 = arith.constant 0 : index
    %c0_9 = arith.constant 0 : index
    %20 = vector.load %arg3[%c0_7, %c0_8, %c0_9] : memref<1x1x1xf32, #tpu.memory_space<vmem>>, vector<1x1x1xf32>
    %21 = vector.shape_cast %20 : vector<1x1x1xf32> to vector<1x1xf32>
    %22 = vector.shape_cast %19 : vector<1x1xf32> to vector<1x1x1xf32>
    tpu.vector_store %arg3[%c0_7, %c0_8, %c0_9], %22 {strides = array<i32>} : memref<1x1x1xf32, #tpu.memory_space<vmem>>, vector<1x1x1xf32>,
    return
  }
  func.func @transform_0(%arg0: i32) -> (i32, i32) {
    %c0_i32 = arith.constant 0 : i32
    %c0_i32_0 = arith.constant 0 : i32
    return %arg0, %c0_i32 : i32, i32
  }
  func.func @transform_1(%arg0: i32) -> (i32, i32) {
    %c0_i32 = arith.constant 0 : i32
    %c0_i32_0 = arith.constant 0 : i32
    return %arg0, %c0_i32 : i32, i32
  }
  func.func @transform_2(%arg0: i32) -> (i32, i32, i32) {
    %c0_i32 = arith.constant 0 : i32
    %c0_i32_0 = arith.constant 0 : i32
    %c0_i32_1 = arith.constant 0 : i32
    return %arg0, %c0_i32, %c0_i32_0 : i32, i32, i32
  }
}

</mosaic_0001>

<bundles_post_ra>
// kernel: tpu_custom_call.1
= control target key start
LH: loop header
LB: loop body
LE: loop exit
PB: predicated region body
PF: predicated region fallthrough
CT: control target
= control target key end

     0   :  { %7 = vsyncpa [#allocation3], 0  ;;  %s634_s0 = inlined_call_operand.hbm [shape: f32[16,128], index: 0, kind: input, shape index: {}]   ;;  %s635_s1 = inlined_call_operand.hbm [shape: f32[16,128], index: 1, kind: input, shape index: {}]   ;;  %s636_s2 = inlined_call_operand.vmem [shape: f32[2,1,1], index: 2, kind: output, shape index: {}]  }
   0x1   :  { %9 = vsyncpa [#allocation3 + $0x1], 0 }
   0x2   :  { %10 = vsyncpa [#allocation5], 0 }
   0x3   :  { %12 = vsyncpa [#allocation5 + $0x1], 0  ;;  %s480_s9 = smov 0   ;;  %s482_s10 = smov 0  }
   0x4   :  { %s484_s11 = smov 0   ;;  %s486_s12 = smov 0  }
   0x5 LB: > { %s499_s13 = sadd.s32 4294967295, %s461_s12   ;;  %s502_s14 = sadd.s32 1, %s461_s12   ;;  %s461_s12 = sphi %s486_s12, %s648_s12   ;;  %s457_s11 = sphi %s484_s11, %s647_s11   ;;  %s453_s10 = sphi %s482_s10, %s646_s10   ;;  %s449_s9 = sphi %s480_s9, %s645_s9  }
   0x6   : > { %s22_s15 = ssub.s32 %s461_s12, %s502_s14  ;;  %s25_s16 = sadd.s32 1, %s457_s11 }
   0x7   : > { %p23_p0 = scmp.eq.s32.totalorder %s22_s15, 0  ;;  %p32_p1 = scmp.ne.s32.totalorder %s457_s11, %s453_s10 }
   0x8   : > { %p33_p2 = scmp.eq.s32.totalorder %s461_s12, 0  ;;  %p38_p3 = scmp.ne.s32.totalorder %s453_s10, %s449_s9 }
   0x9   : > { %s512_s17 = scalar_select %p23_p0, %s457_s11, %s25_s16  }
   0xa   : > { %p34_p4 = por %p33_p2, %p32_p1  ;;  %p39_p5 = scmp.eq.s32.totalorder %s499_s13, 0 }
   0xb   : > { %p326_p6 = scmp.lt.s32.totalorder %s461_s12, 2  ;;  %s521_s19 = sand.u32 1, %s457_s11  }
   0xc   : > { %p516_p7 = por %p39_p5, %p38_p3  ;;  %s306_s20 = sshll.u32 %s521_s19, 3 }
   0xd   : > { %s307_s21 = sshll.u32 %s461_s12, 7  ;;  %s118_s25 = scalar_lea.vmem [#allocation2], %s306_s20 }
   0xe   : > { %s638_s18 = scalar_select %p516_p7, 1, 0 }
   0xf   : > { %s530_s24 = scalar_lea.hbm %s634_s0, %s307_s21  ;;  %s125_s26 = sshll.u32 %s118_s25, 4  ;;  %s534_s26 = int_to_ptr.vmem [resolvable:$true] %s125_s26 }
  0x10   : > { %p536_p8 = pnand %p326_p6, %p34_p4  ;;  %s115_s28 = scalar_lea.sflag [#allocation3], %s521_s19 }
  0x11   : > { %s363_s29 = scalar_lea.hbm %s530_s24, 128  ;;  %s368_s4 = scalar_lea.hbm %s634_s0, 256 }
  0x12   : > { %p364_p11 = scmp.ne.s32.totalorder %s530_s24, %s363_s29  ;;  %p365_p12 = pneg %p536_p8 }
  0x13   : > { %p369_p1 = scmp.lt.u32.totalorder %s530_s24, %s634_s0  ;;  %p370_p2 = scmp.lt.u32.totalorder %s368_s4, %s363_s29 }
  0x14   : > { %p366_p13 = pnand %p365_p12, %p364_p11  ;;  %p372_p4 = scmp.lt.u32.totalorder %s363_s29, %s530_s24 }
  0x15   : > { %p371_p3 = por %p370_p2, %p369_p1 }
  0x16   : > { %p367_p0 = pneg %p366_p13 }
  0x17   : > { %p373_p5 = por %p372_p4, %p371_p3 }
  0x19   : > { %p374_p6 = pnand %p373_p5, %p367_p0 }
  0x1b   : > { %377 = shalt.err (!%p374_p6)
}
  0x1c   : > { %s378_s7 = scalar_lea.vmem %s534_s26, 128  ;;  %s463_s8 = smov [#allocation2]  }
  0x1d   : > { %p379_p11 = scmp.ne.s32.totalorder %s534_s26, %s378_s7  ;;  %s383_s9 = sshll.u32 %s463_s8, 4  ;;  %s384_s9 = int_to_ptr.vmem [resolvable:$false] %s383_s9 }
  0x1e   : > { %s385_s15 = scalar_lea.vmem %s384_s9, 256  ;;  %p386_p10 = scmp.lt.s32.totalorder %s534_s26, %s384_s9 }
  0x1f   : > { %p381_p13 = pnand %p379_p11, %p365_p12  ;;  %p387_p1 = scmp.lt.s32.totalorder %s385_s15, %s378_s7 }
  0x21   : > { %p382_p9 = pneg %p381_p13  ;;  %p388_p2 = por %p387_p1, %p386_p10 }
  0x23   : > { %p389_p3 = pnand %p388_p2, %p382_p9 }
  0x25   : > { %392 = shalt.err (!%p389_p3)
}
  0x26   : > { %322 = dma.hbm_to_vmem [thread:$0]  (!%p536_p8), %s530_s24, 128, %s534_s26, %s115_s28  }
  0x27   : > { %p640_p0 = scmp.lt.s32.totalorder %s461_s12, 3  ;;  %p641_p4 = scmp.ge.s32.totalorder %s461_s12, 1 }
  0x28   : > { %s581_s25 = scalar_lea.hbm %s635_s1, %s307_s21  ;;  %s136_s29 = scalar_lea.vmem [#allocation4], %s306_s20 }
  0x29   : > { %p572_p5 = pnand %p641_p4, %p640_p0  ;;  %s143_s30 = sshll.u32 %s136_s29, 4  ;;  %s144_s30 = int_to_ptr.vmem [resolvable:$true] %s143_s30 }
  0x2a   : > { %s133_s24 = scalar_lea.sflag [#allocation5], %s521_s19  ;;  %s393_s26 = scalar_lea.hbm %s581_s25, 128 }
  0x2b   : > { %s642_s16 = scalar_select %p572_p5, 1, 0 }
  0x2c   : > { %p394_p9 = scmp.ne.s32.totalorder %s581_s25, %s393_s26  ;;  %s398_s21 = scalar_lea.hbm %s635_s1, 256 }
  0x2d   : > { %p399_p11 = scmp.lt.u32.totalorder %s581_s25, %s635_s1  ;;  %p400_p13 = scmp.lt.u32.totalorder %s398_s21, %s393_s26 }
  0x2e   : > { %p396_p10 = pnand %p394_p9, %p365_p12  ;;  %p402_p2 = scmp.lt.u32.totalorder %s393_s26, %s581_s25 }
  0x2f   : > { %p401_p1 = por %p400_p13, %p399_p11 }
  0x30   : > { %p397_p6 = pneg %p396_p10 }
  0x31   : > { %p403_p3 = por %p402_p2, %p401_p1 }
  0x33   : > { %p404_p0 = pnand %p403_p3, %p397_p6 }
  0x35   : > { %407 = shalt.err (!%p404_p0)
}
  0x36   : > { %s408_s19 = scalar_lea.vmem %s144_s30, 128  ;;  %s464_s20 = smov [#allocation4]  }
  0x37   : > { %p409_p4 = scmp.ne.s32.totalorder %s144_s30, %s408_s19  ;;  %s413_s5 = sshll.u32 %s464_s20, 4  ;;  %s414_s5 = int_to_ptr.vmem [resolvable:$false] %s413_s5 }
  0x38   : > { %s415_s6 = scalar_lea.vmem %s414_s5, 256  ;;  %p416_p7 = scmp.lt.s32.totalorder %s144_s30, %s414_s5 }
  0x39   : > { %p411_p9 = pnand %p409_p4, %p365_p12  ;;  %p417_p5 = scmp.lt.s32.totalorder %s415_s6, %s408_s19 }
  0x3b   : > { %p412_p10 = pneg %p411_p9  ;;  %p418_p11 = por %p417_p5, %p416_p7 }
  0x3d   : > { %p419_p13 = pnand %p418_p11, %p412_p10 }
  0x3f   : > { %422 = shalt.err (!%p419_p13)
}
  0x40   : > { %325 = dma.hbm_to_vmem [thread:$0]  (!%p536_p8), %s581_s25, 128, %s144_s30, %s133_s24  }
  0x41   : > { %p643_p6 = scmp.ne.s32.totalorder %s642_s16, 0 }
  0x42   : > { %s154_s7 = sand.u32 (!%p643_p6), 1, %s453_s10   ;;  %p644_p12 = scmp.ne.s32.totalorder (!%p643_p6), %s638_s18, 0 }
  0x43   : > { %152 = sbr.rel (%p643_p6) target bundleno = 409 (0x199), region = 28  ;;  %s311_s8 = sshll.u32 (!%p643_p6), %s154_s7, 3 }
  0x44   : > { %s155_s9 = scalar_lea.sflag (!%p643_p6), [#allocation3], %s154_s7  ;;  %s158_s15 = scalar_lea.vmem (!%p643_p6), [#allocation2], %s311_s8 }
  0x4a   : > { %440 = dma.done.wait (%p644_p12), %s155_s9, 128  }
  0x4b   : > { %442 = vsyncadd (%p644_p12), %s155_s9, 4294967168  ;;  %s164_s22 = scalar_lea.sflag [#allocation5], %s154_s7  ;;  %s167_s23 = scalar_lea.vmem [#allocation4], %s311_s8 }
  0x4c   : > { %444 = dma.done.wait (%p644_p12), %s164_s22, 128  }
  0x4d   : > { %446 = vsyncadd (%p644_p12), %s164_s22, 4294967168  ;;  %v194_v0 = vld [vmem:[%s158_s15] sm:$0xff]  ;;  %v195_v1 = vld [vmem:[%s167_s23] sm:$0xff]  ;;  %p191_p7 = scmp.lt.s32.totalorder %s499_s13, 1  ;;  %vm219_vm0 = vcmask 0  }
  0x4e   : > { %196 = vmax.xlane.f32.xlu0 %v194_v0  ;;  %206 = vadd.xlane.f32.xlu1 %v195_v1  ;;  %v208_v2 = vmul.f32 %v195_v1, %v194_v0 }
  0x4f   : > { %s650_s13 = smov (!%p191_p7, %s499_s13), 1 }
  0x50   : > { %s193_s16 = scalar_lea.vmem %s636_s2, %s650_s13 }
  0x52   : > { %209 = vadd.xlane.f32.xlu1 %v208_v2 }
  0xdb   : > { %v197_v3 = vpop.xlane.xlu0 %196  ;;  %v207_v8 = vpop.xlane.xlu1 %206 }
  0xdc   : > { %v198_v4 = vsub.f32 %v194_v0, %v197_v3 }
  0xde   : > { %v199_v5 = vmul.f32 1.442695, %v198_v4 }
  0xdf   : > { %v210_v12 = vpop.xlane.xlu1 %209 }
  0xe0   : > { %359 = vpow2.f32 %v199_v5 }
  0xea   : > { %v360_v6 = vpop.eup %359 }
  0xeb   : > { %201 = vadd.xlane.f32.xlu0 %v360_v6 }
 0x178   : > { %v202_v7 = vpop.xlane.xlu0 %201 }
 0x179   : > { %361 = vlog2.f32 %v202_v7 }
 0x183   : > { %v362_v9 = vpop.eup %361 }
 0x184   : > { %v204_v10 = vmul.f32 0.6931472, %v362_v9 }
 0x186   : > { %v205_v11 = vadd.f32 %v204_v10, %v197_v3 }
 0x188   : > { %v211_v13 = vmul.f32 %v207_v8, %v205_v11 }
 0x18a   : > { %v212_v14 = vsub.f32 %v211_v13, %v210_v12 }
 0x18c   : > { %v213_v15 = vrot.slane %v212_v14, 4 }
 0x18e   : > { %v214_v16 = vadd.f32 %v213_v15, %v212_v14 }
 0x190   : > { %v215_v17 = vrot.slane %v214_v16, 2 }
 0x192   : > { %v216_v18 = vadd.f32 %v215_v17, %v214_v16 }
 0x194   : > { %v217_v19 = vrot.slane %v216_v18, 1 }
 0x196   : > { %v218_v20 = vadd.f32 %v217_v19, %v216_v18 }
 0x198   : > { %220 = vst.msk [vmem:[%s193_s16] sm:$0x1] %vm219_vm0, %v218_v20 }
 0x199 PF: > { %p15_p8 = scmp.ge.s32.totalorder %s502_s14, 4   ;;  %s645_s9 = smov %s453_s10 }
 0x19a   : > { %s646_s10 = smov %s457_s11  ;;  %s647_s11 = smov %s512_s17 }
 0x19b   : > { %s648_s12 = smov %s502_s14  ;;  %17 = sbr.rel (!%p15_p8) target bundleno = 5 (0x5), region = 81 }
 0x1a2   :  { %238 = vsyncpa [#allocation3], 1 }
 0x1a3   :  { %240 = vsyncpa [#allocation3 + $0x1], 1 }
 0x1a4   :  { %241 = vsyncpa [#allocation5], 1 }
 0x1a5   :  { %243 = vsyncpa [#allocation5 + $0x1], 1 }

</bundles_post_ra>
